<compile_context>
chip_gen: v7x
topology: tpu7x:2x2x1
jax: 0.10.0
libtpu: 0.0.40
codegen_flags: <defaults>
</compile_context>

<pallas_src>
import jax
import jax.numpy as jnp
from jax.experimental import pallas as pl
from jax.experimental.pallas import tpu as pltpu

EPS = 1e-5
LANE = 128
SUBLANE = 8


def _round_up(n, m):
    return ((n + m - 1) // m) * m


def make_dnn_kernel(dims_p, real_batch, padded_batch):
    """Kernel args: (alpha_smem, gammabeta_vmem, x_vmem, w_0..w_{L-1}, out)."""
    n_layers = len(dims_p) - 1
    need_mask = padded_batch != real_batch
    inv_n = 1.0 / float(real_batch)

    def kernel(alpha_ref, gb_ref, x_ref, *rest):
        o_ref = rest[-1]
        w_refs = rest[:-1]
        assert len(w_refs) == n_layers

        if need_mask:
            row = jax.lax.broadcasted_iota(jnp.int32, (padded_batch, 1), 0)
            mask = (row < real_batch).astype(jnp.float32)
        else:
            mask = None

        h = x_ref[...]                       # bf16, lane-dense
        for l in range(n_layers):
            dop = dims_p[l + 1]

            # Linear (bias dropped: it cancels exactly in train-mode BN).
            # bf16 MXU inputs, f32 accumulation.
            y = jnp.dot(h, w_refs[l][...], preferred_element_type=jnp.float32)

            # BatchNorm1d, training mode (biased variance). Single fused
            # sublane reduction over a lane-concatenated [ym, ym*y] slab.
            ym = y if mask is None else y * mask
            s = jnp.sum(jnp.concatenate([ym, ym * y], axis=1),
                        axis=0, keepdims=True)
            mean = s[:, :dop] * inv_n
            var = jnp.maximum(s[:, dop:] * inv_n - mean * mean, 0.0)
            # TODO(synk): single-pass E[y^2]-mean^2 can cancel for strongly
            # offset post-linear activations; use a shifted/compensated pass if
            # the real workload is not roughly zero-mean.

            g = gb_ref[2 * l:2 * l + 1, :dop]        # gamma row
            be = gb_ref[2 * l + 1:2 * l + 2, :dop]   # beta row
            scale = g * jax.lax.rsqrt(var + EPS)
            shift = be - mean * scale
            y = y * scale + shift                    # fused BN affine (FMA)

            # PReLU with a single shared scalar slope (from SMEM).
            a = alpha_ref[l]
            y = jnp.where(y > 0, y, a * y)

            # Next matmul wants bf16 inputs; keep last-layer output in f32.
            h = y.astype(jnp.bfloat16) if l + 1 < n_layers else y

        o_ref[...] = h

    return kernel


def make_dnn(params, batch):
    """Pack/pad parameters once and return a jitted forward(x) function.

    params: list of (w, b, gamma, beta, alpha) per FcBlock, w of shape
    (in_features, out_features)."""
    n_layers = len(params)
    in_dim = params[0][0].shape[0]
    out_dim = params[-1][0].shape[1]
    dims = [in_dim] + [p[0].shape[1] for p in params]
    dims_p = [_round_up(d, LANE) for d in dims]
    b_pad = _round_up(batch, SUBLANE)

    # ---- one-time parameter packing (hoisted out of the per-call path) ----
    gbw = max(dims_p[1:])
    gb_rows = _round_up(2 * n_layers, SUBLANE)
    gb = jnp.zeros((gb_rows, gbw), jnp.float32)   # padded lanes stay 0 -> inert
    weights = []
    alphas = []
    for l, (w, b, g, be, a) in enumerate(params):
        di, do = w.shape
        dip, dop = dims_p[l], dims_p[l + 1]
        wp = jnp.zeros((dip, dop), jnp.bfloat16).at[:di, :do].set(
            w.astype(jnp.bfloat16))
        weights.append(wp)
        # Linear bias `b` is intentionally not passed to the kernel (cancels
        # in train-mode BatchNorm).
        gb = gb.at[2 * l, :do].set(g.astype(jnp.float32))
        gb = gb.at[2 * l + 1, :do].set(be.astype(jnp.float32))
        alphas.append(jnp.asarray(a, jnp.float32).reshape(()))
    alpha_vec = jnp.stack(alphas)   # (n_layers,) f32 -> SMEM

    kernel = make_dnn_kernel(tuple(dims_p), batch, b_pad)
    vmem = pl.BlockSpec(memory_space=pltpu.MemorySpace.VMEM)
    smem = pl.BlockSpec(memory_space=pltpu.MemorySpace.SMEM)

    # Raise the scoped VMEM limit only when the resident footprint needs it
    # (v5e scoped default is 16 MiB; v6e/v7x 32 MiB).
    est_bytes = (b_pad * dims_p[0] * 2                 # x (bf16)
                 + b_pad * dims_p[-1] * 4              # out (f32)
                 + sum(w.size * 2 for w in weights)    # resident weights
                 + gb.size * 4
                 + b_pad * max(dims_p[1:]) * 4 * 4)    # activation headroom
    if est_bytes > (16 << 20):
        compiler_params = pltpu.CompilerParams(
            vmem_limit_bytes=int(min(2 * est_bytes, 64 << 20)))
    else:
        compiler_params = None

    pc = pl.pallas_call(
        kernel,
        out_shape=jax.ShapeDtypeStruct((b_pad, dims_p[-1]), jnp.float32),
        in_specs=[smem, vmem, vmem] + [vmem] * n_layers,
        out_specs=vmem,
        compiler_params=compiler_params,
    )

    @jax.jit
    def forward(x):
        # Per-call path is only: pad/cast x -> fused kernel -> slice output.
        xp = jnp.zeros((b_pad, dims_p[0]), jnp.bfloat16)
        xp = xp.at[:batch, :in_dim].set(x.astype(jnp.bfloat16))
        out_p = pc(alpha_vec, gb, xp, *weights)
        return out_p[:batch, :out_dim]

    return forward


def init_params(key, in_dim, node_dim, out_dim, layer_dim=3):
    """PyTorch-default-style init: Linear uniform(+-1/sqrt(fan_in)),
    BN gamma=1 / beta=0, PReLU a=0.25.  Weights stored as (in, out)."""
    dims = [in_dim] + [node_dim] * (layer_dim - 1) + [out_dim]
    params = []
    for di, do in zip(dims[:-1], dims[1:]):
        key, kw, kb = jax.random.split(key, 3)
        bound = float(di) ** -0.5
        w = jax.random.uniform(kw, (di, do), jnp.float32, -bound, bound)
        b = jax.random.uniform(kb, (do,), jnp.float32, -bound, bound)
        g = jnp.ones((do,), jnp.float32)
        be = jnp.zeros((do,), jnp.float32)
        a = jnp.float32(0.25)
        params.append((w, b, g, be, a))
    return params


def dnn_reference(x, params):
    """Pure-JAX reference matching torch training-mode semantics (Linear with
    bias, batch-stats BN with biased variance, eps=1e-5, shared-scalar PReLU),
    using the same bf16-matmul / f32-accumulate math as the kernel."""
    h = x
    for (w, b, g, be, a) in params:
        y = jnp.dot(h.astype(jnp.bfloat16), w.astype(jnp.bfloat16),
                    preferred_element_type=jnp.float32) + b.reshape(1, -1)
        mean = jnp.mean(y, axis=0, keepdims=True)
        var = jnp.mean((y - mean) ** 2, axis=0, keepdims=True)
        y = (y - mean) * jax.lax.rsqrt(var + EPS)
        y = y * g.reshape(1, -1) + be.reshape(1, -1)
        h = jnp.where(y > 0, y, a * y)
    return h


if __name__ == "__main__":
    key = jax.random.PRNGKey(0)
    # Module defaults: layer_dim=3, node_dim=100 (DNN(in_dim, out_dim)).
    batch, in_dim, node_dim, out_dim = 64, 16, 100, 8

    kx, kp = jax.random.split(key)
    x = jax.random.normal(kx, (batch, in_dim), jnp.float32)
    params = init_params(kp, in_dim, node_dim, out_dim, layer_dim=3)

    forward = make_dnn(params, batch)
    out = jax.block_until_ready(forward(x))

    ref = dnn_reference(x, params)
    assert out.shape == (batch, out_dim)
    assert jnp.allclose(out, ref, atol=2e-3, rtol=2e-3), "mismatch vs JAX reference"

    print("KERNEL_OK")
</pallas_src>

<mosaic_0001>
module attributes {stable_mosaic.version = 11 : i64} {
  func.func @kernel(%arg0: memref<3xf32, #tpu.memory_space<smem>>, %arg1: memref<8x128xf32, #tpu.memory_space<vmem>>, %arg2: memref<64x128xbf16, #tpu.memory_space<vmem>>, %arg3: memref<128x128xbf16, #tpu.memory_space<vmem>>, %arg4: memref<128x128xbf16, #tpu.memory_space<vmem>>, %arg5: memref<128x128xbf16, #tpu.memory_space<vmem>>, %arg6: memref<64x128xf32, #tpu.memory_space<vmem>>) attributes {dimension_semantics = [], scalar_prefetch = 0 : i64, scratch_operands = 0 : i64, tpu.core_type = #tpu.core_type<tc>} {
    %c0 = arith.constant 0 : index
    %c0_0 = arith.constant 0 : index
    %0 = vector.load %arg2[%c0, %c0_0] : memref<64x128xbf16, #tpu.memory_space<vmem>>, vector<64x128xbf16>
    %c0_1 = arith.constant 0 : index
    %c0_2 = arith.constant 0 : index
    %1 = vector.load %arg3[%c0_1, %c0_2] : memref<128x128xbf16, #tpu.memory_space<vmem>>, vector<128x128xbf16>
    %cst = arith.constant dense<0.000000e+00> : vector<64x128xf32>
    %2 = tpu.matmul %0, %1, %cst {dimension_numbers = #tpu.dot_dimension_numbers<[1], [0], [0], [1], [0, 0, 1, 1], [], []>} : vector<64x128xbf16>, vector<128x128xbf16>, vector<64x128xf32> -> vector<64x128xf32>
    %3 = arith.mulf %2, %2 : vector<64x128xf32>
    %4 = tpu.concatenate %2, %3 in 1 : vector<64x128xf32>, vector<64x128xf32> -> vector<64x256xf32>
    %cst_3 = arith.constant dense<0.000000e+00> : vector<256xf32>
    %5 = vector.multi_reduction <add>, %4, %cst_3 [0] : vector<64x256xf32> to vector<256xf32>
    %6 = vector.shape_cast %5 : vector<256xf32> to vector<1x256xf32>
    %7 = vector.extract_strided_slice %6 {offsets = [0, 0], sizes = [1, 128], strides = [1, 1]} : vector<1x256xf32> to vector<1x128xf32>
    %cst_4 = arith.constant 1.562500e-02 : f32
    %8 = vector.broadcast %cst_4 : f32 to vector<1x128xf32>
    %9 = arith.mulf %7, %8 : vector<1x128xf32>
    %10 = vector.extract_strided_slice %6 {offsets = [0, 128], sizes = [1, 128], strides = [1, 1]} : vector<1x256xf32> to vector<1x128xf32>
    %cst_5 = arith.constant 1.562500e-02 : f32
    %11 = vector.broadcast %cst_5 : f32 to vector<1x128xf32>
    %12 = arith.mulf %10, %11 : vector<1x128xf32>
    %13 = arith.mulf %9, %9 : vector<1x128xf32>
    %14 = arith.subf %12, %13 : vector<1x128xf32>
    %cst_6 = arith.constant 0.000000e+00 : f32
    %15 = vector.broadcast %cst_6 : f32 to vector<1x128xf32>
    %16 = arith.maximumf %14, %15 : vector<1x128xf32>
    %c0_7 = arith.constant 0 : index
    %c0_8 = arith.constant 0 : index
    %17 = vector.load %arg1[%c0_7, %c0_8] : memref<8x128xf32, #tpu.memory_space<vmem>>, vector<1x128xf32>
    %c1 = arith.constant 1 : index
    %c0_9 = arith.constant 0 : index
    %18 = vector.load %arg1[%c1, %c0_9] : memref<8x128xf32, #tpu.memory_space<vmem>>, vector<1x128xf32>
    %cst_10 = arith.constant 9.99999974E-6 : f32
    %19 = vector.broadcast %cst_10 : f32 to vector<1x128xf32>
    %20 = arith.addf %16, %19 : vector<1x128xf32>
    %21 = math.rsqrt %20 : vector<1x128xf32>
    %22 = arith.mulf %17, %21 : vector<1x128xf32>
    %23 = arith.mulf %9, %22 : vector<1x128xf32>
    %24 = arith.subf %18, %23 : vector<1x128xf32>
    %25 = vector.broadcast %22 : vector<1x128xf32> to vector<64x128xf32>
    %26 = arith.mulf %2, %25 : vector<64x128xf32>
    %27 = vector.broadcast %24 : vector<1x128xf32> to vector<64x128xf32>
    %28 = arith.addf %26, %27 : vector<64x128xf32>
    %c0_11 = arith.constant 0 : index
    %29 = memref.load %arg0[%c0_11] : memref<3xf32, #tpu.memory_space<smem>>
    %cst_12 = arith.constant 0.000000e+00 : f32
    %30 = vector.broadcast %cst_12 : f32 to vector<64x128xf32>
    %31 = arith.cmpf ogt, %28, %30 : vector<64x128xf32>
    %32 = vector.broadcast %29 : f32 to vector<64x128xf32>
    %33 = arith.mulf %32, %28 : vector<64x128xf32>
    %34 = arith.select %31, %28, %33 : vector<64x128xi1>, vector<64x128xf32>
    %35 = arith.truncf %34 : vector<64x128xf32> to vector<64x128xbf16>
    %c0_13 = arith.constant 0 : index
    %c0_14 = arith.constant 0 : index
    %36 = vector.load %arg4[%c0_13, %c0_14] : memref<128x128xbf16, #tpu.memory_space<vmem>>, vector<128x128xbf16>
    %cst_15 = arith.constant dense<0.000000e+00> : vector<64x128xf32>
    %37 = tpu.matmul %35, %36, %cst_15 {dimension_numbers = #tpu.dot_dimension_numbers<[1], [0], [0], [1], [0, 0, 1, 1], [], []>} : vector<64x128xbf16>, vector<128x128xbf16>, vector<64x128xf32> -> vector<64x128xf32>
    %38 = arith.mulf %37, %37 : vector<64x128xf32>
    %39 = tpu.concatenate %37, %38 in 1 : vector<64x128xf32>, vector<64x128xf32> -> vector<64x256xf32>
    %cst_16 = arith.constant dense<0.000000e+00> : vector<256xf32>
    %40 = vector.multi_reduction <add>, %39, %cst_16 [0] : vector<64x256xf32> to vector<256xf32>
    %41 = vector.shape_cast %40 : vector<256xf32> to vector<1x256xf32>
    %42 = vector.extract_strided_slice %41 {offsets = [0, 0], sizes = [1, 128], strides = [1, 1]} : vector<1x256xf32> to vector<1x128xf32>
    %cst_17 = arith.constant 1.562500e-02 : f32
    %43 = vector.broadcast %cst_17 : f32 to vector<1x128xf32>
    %44 = arith.mulf %42, %43 : vector<1x128xf32>
    %45 = vector.extract_strided_slice %41 {offsets = [0, 128], sizes = [1, 128], strides = [1, 1]} : vector<1x256xf32> to vector<1x128xf32>
    %cst_18 = arith.constant 1.562500e-02 : f32
    %46 = vector.broadcast %cst_18 : f32 to vector<1x128xf32>
    %47 = arith.mulf %45, %46 : vector<1x128xf32>
    %48 = arith.mulf %44, %44 : vector<1x128xf32>
    %49 = arith.subf %47, %48 : vector<1x128xf32>
    %cst_19 = arith.constant 0.000000e+00 : f32
    %50 = vector.broadcast %cst_19 : f32 to vector<1x128xf32>
    %51 = arith.maximumf %49, %50 : vector<1x128xf32>
    %c2 = arith.constant 2 : index
    %c0_20 = arith.constant 0 : index
    %52 = vector.load %arg1[%c2, %c0_20] : memref<8x128xf32, #tpu.memory_space<vmem>>, vector<1x128xf32>
    %c3 = arith.constant 3 : index
    %c0_21 = arith.constant 0 : index
    %53 = vector.load %arg1[%c3, %c0_21] : memref<8x128xf32, #tpu.memory_space<vmem>>, vector<1x128xf32>
    %cst_22 = arith.constant 9.99999974E-6 : f32
    %54 = vector.broadcast %cst_22 : f32 to vector<1x128xf32>
    %55 = arith.addf %51, %54 : vector<1x128xf32>
    %56 = math.rsqrt %55 : vector<1x128xf32>
    %57 = arith.mulf %52, %56 : vector<1x128xf32>
    %58 = arith.mulf %44, %57 : vector<1x128xf32>
    %59 = arith.subf %53, %58 : vector<1x128xf32>
    %60 = vector.broadcast %57 : vector<1x128xf32> to vector<64x128xf32>
    %61 = arith.mulf %37, %60 : vector<64x128xf32>
    %62 = vector.broadcast %59 : vector<1x128xf32> to vector<64x128xf32>
    %63 = arith.addf %61, %62 : vector<64x128xf32>
    %c1_23 = arith.constant 1 : index
    %64 = memref.load %arg0[%c1_23] : memref<3xf32, #tpu.memory_space<smem>>
    %cst_24 = arith.constant 0.000000e+00 : f32
    %65 = vector.broadcast %cst_24 : f32 to vector<64x128xf32>
    %66 = arith.cmpf ogt, %63, %65 : vector<64x128xf32>
    %67 = vector.broadcast %64 : f32 to vector<64x128xf32>
    %68 = arith.mulf %67, %63 : vector<64x128xf32>
    %69 = arith.select %66, %63, %68 : vector<64x128xi1>, vector<64x128xf32>
    %70 = arith.truncf %69 : vector<64x128xf32> to vector<64x128xbf16>
    %c0_25 = arith.constant 0 : index
    %c0_26 = arith.constant 0 : index
    %71 = vector.load %arg5[%c0_25, %c0_26] : memref<128x128xbf16, #tpu.memory_space<vmem>>, vector<128x128xbf16>
    %cst_27 = arith.constant dense<0.000000e+00> : vector<64x128xf32>
    %72 = tpu.matmul %70, %71, %cst_27 {dimension_numbers = #tpu.dot_dimension_numbers<[1], [0], [0], [1], [0, 0, 1, 1], [], []>} : vector<64x128xbf16>, vector<128x128xbf16>, vector<64x128xf32> -> vector<64x128xf32>
    %73 = arith.mulf %72, %72 : vector<64x128xf32>
    %74 = tpu.concatenate %72, %73 in 1 : vector<64x128xf32>, vector<64x128xf32> -> vector<64x256xf32>
    %cst_28 = arith.constant dense<0.000000e+00> : vector<256xf32>
    %75 = vector.multi_reduction <add>, %74, %cst_28 [0] : vector<64x256xf32> to vector<256xf32>
    %76 = vector.shape_cast %75 : vector<256xf32> to vector<1x256xf32>
    %77 = vector.extract_strided_slice %76 {offsets = [0, 0], sizes = [1, 128], strides = [1, 1]} : vector<1x256xf32> to vector<1x128xf32>
    %cst_29 = arith.constant 1.562500e-02 : f32
    %78 = vector.broadcast %cst_29 : f32 to vector<1x128xf32>
    %79 = arith.mulf %77, %78 : vector<1x128xf32>
    %80 = vector.extract_strided_slice %76 {offsets = [0, 128], sizes = [1, 128], strides = [1, 1]} : vector<1x256xf32> to vector<1x128xf32>
    %cst_30 = arith.constant 1.562500e-02 : f32
    %81 = vector.broadcast %cst_30 : f32 to vector<1x128xf32>
    %82 = arith.mulf %80, %81 : vector<1x128xf32>
    %83 = arith.mulf %79, %79 : vector<1x128xf32>
    %84 = arith.subf %82, %83 : vector<1x128xf32>
    %cst_31 = arith.constant 0.000000e+00 : f32
    %85 = vector.broadcast %cst_31 : f32 to vector<1x128xf32>
    %86 = arith.maximumf %84, %85 : vector<1x128xf32>
    %c4 = arith.constant 4 : index
    %c0_32 = arith.constant 0 : index
    %87 = vector.load %arg1[%c4, %c0_32] : memref<8x128xf32, #tpu.memory_space<vmem>>, vector<1x128xf32>
    %c5 = arith.constant 5 : index
    %c0_33 = arith.constant 0 : index
    %88 = vector.load %arg1[%c5, %c0_33] : memref<8x128xf32, #tpu.memory_space<vmem>>, vector<1x128xf32>
    %cst_34 = arith.constant 9.99999974E-6 : f32
    %89 = vector.broadcast %cst_34 : f32 to vector<1x128xf32>
    %90 = arith.addf %86, %89 : vector<1x128xf32>
    %91 = math.rsqrt %90 : vector<1x128xf32>
    %92 = arith.mulf %87, %91 : vector<1x128xf32>
    %93 = arith.mulf %79, %92 : vector<1x128xf32>
    %94 = arith.subf %88, %93 : vector<1x128xf32>
    %95 = vector.broadcast %92 : vector<1x128xf32> to vector<64x128xf32>
    %96 = arith.mulf %72, %95 : vector<64x128xf32>
    %97 = vector.broadcast %94 : vector<1x128xf32> to vector<64x128xf32>
    %98 = arith.addf %96, %97 : vector<64x128xf32>
    %c2_35 = arith.constant 2 : index
    %99 = memref.load %arg0[%c2_35] : memref<3xf32, #tpu.memory_space<smem>>
    %cst_36 = arith.constant 0.000000e+00 : f32
    %100 = vector.broadcast %cst_36 : f32 to vector<64x128xf32>
    %101 = arith.cmpf ogt, %98, %100 : vector<64x128xf32>
    %102 = vector.broadcast %99 : f32 to vector<64x128xf32>
    %103 = arith.mulf %102, %98 : vector<64x128xf32>
    %104 = arith.select %101, %98, %103 : vector<64x128xi1>, vector<64x128xf32>
    %c0_37 = arith.constant 0 : index
    %c0_38 = arith.constant 0 : index
    %105 = vector.load %arg6[%c0_37, %c0_38] : memref<64x128xf32, #tpu.memory_space<vmem>>, vector<64x128xf32>
    tpu.vector_store %arg6[%c0_37, %c0_38], %104 {strides = array<i32>} : memref<64x128xf32, #tpu.memory_space<vmem>>, vector<64x128xf32>,
    return
  }
}

</mosaic_0001>

<bundles_post_ra>
// kernel: forward.1
= control target key start
LH: loop header
LB: loop body
LE: loop exit
PB: predicated region body
PF: predicated region fallthrough
CT: control target
= control target key end

     0   :  { %11 = vsyncpa [#allocation3], 0  ;;  %s1155_s0 = inlined_call_operand.vmem [shape: f32[3], index: 0, kind: input, shape index: {}]   ;;  %s1156_s1 = inlined_call_operand.vmem [shape: f32[8,128], index: 1, kind: input, shape index: {}]   ;;  %s1157_s2 = inlined_call_operand.vmem [shape: bf16[64,128], index: 2, kind: input, shape index: {}]   ;;  %s1158_s3 = inlined_call_operand.vmem [shape: bf16[128,128], index: 3, kind: input, shape index: {}]   ;;  %s1159_s4 = inlined_call_operand.vmem [shape: bf16[128,128], index: 4, kind: input, shape index: {}]   ;;  %s1160_s5 = inlined_call_operand.vmem [shape: bf16[128,128], index: 5, kind: input, shape index: {}]   ;;  %s1161_s6 = inlined_call_operand.vmem [shape: f32[64,128], index: 6, kind: output, shape index: {}]  }
   0x1   :  { %s18_s23 = sshll.u32 %s1155_s0, 4  ;;  %s19_s23 = int_to_ptr.vmem [resolvable:$true] %s18_s23 }
   0x2   :  { %s954_s24 = scalar_lea.vmem %s19_s23, 16  ;;  %p959_p1 = scmp.lt.s32.totalorder %s19_s23, %s19_s23 }
   0x3   :  { %p955_p0 = scmp.ne.s32.totalorder %s19_s23, %s954_s24  ;;  %p960_p2 = scmp.lt.s32.totalorder %s954_s24, %s954_s24 }
   0x5   :  { %p961_p3 = por %p960_p2, %p959_p1 }
   0x7   :  { %p962_p4 = pnand %p961_p3, %p955_p0 }
   0x9   :  { %965 = shalt.err (!%p962_p4)
}
   0xa   :  { %s968_s25 = smov [#allocation2]  }
   0xb   :  { %21 = dma.vmem_to_smem %s19_s23, 16, %s968_s25, [#allocation3]  }
   0xc   :  { %966 = dma.done.wait [#allocation3], 16  }
   0xd   :  { %967 = vsyncadd [#allocation3], 4294967280 }
   0xe   :  { %35 = sfence }
   0xf   :  { %v920_v0 = vld [vmem:[%s1158_s3] sm:$0xff]   ;;  %v921_v1 = vld [vmem:[%s1158_s3 + $0x8] sm:$0xff]   ;;  %v922_v2 = vld [vmem:[%s1158_s3 + $0x10] sm:$0xff]   ;;  %s268_s15 = sld [smem:[#allocation2]]  ;;  %s785_s8 = sld [smem:[#allocation2 + $0x1]] }
  0x10   :  { %831 = vmatprep.subr.bf16.mxu0 %v920_v0  ;;  %v923_v3 = vld [vmem:[%s1158_s3 + $0x18] sm:$0xff]   ;;  %v928_v4 = vld [vmem:[%s1157_s2] sm:$0xff]   ;;  %v925_v6 = vld [vmem:[%s1158_s3 + $0x28] sm:$0xff]   ;;  %s794_s13 = sld [smem:[#allocation2 + $0x2]] }
  0x11   :  { %832 = vmatpush3.bf16.msra.mxu0 %v920_v0  ;;  %847 = vmatprep.mubr.bf16.mxu0 %v928_v4  ;;  %v924_v5 = vld [vmem:[%s1158_s3 + $0x20] sm:$0xff]   ;;  %v926_v7 = vld [vmem:[%s1158_s3 + $0x30] sm:$0xff]   ;;  %v927_v8 = vld [vmem:[%s1158_s3 + $0x38] sm:$0xff]   ;;  %v244_v4 = vlaneseq }
  0x12   :  { %833 = vmatprep.subr.bf16.mxu0 %v921_v1  ;;  %v929_v9 = vld [vmem:[%s1157_s2 + $0x8] sm:$0xff]   ;;  %v930_v10 = vld [vmem:[%s1157_s2 + $0x10] sm:$0xff]   ;;  %v931_v11 = vld [vmem:[%s1157_s2 + $0x18] sm:$0xff]  }
  0x13   :  { %v932_v12 = vld [vmem:[%s1159_s4] sm:$0xff]   ;;  %v933_v13 = vld [vmem:[%s1159_s4 + $0x8] sm:$0xff]   ;;  %v934_v14 = vld [vmem:[%s1159_s4 + $0x10] sm:$0xff]  }
  0x14   :  { %855 = vmatprep.subr.bf16.mxu1 %v932_v12  ;;  %v935_v15 = vld [vmem:[%s1159_s4 + $0x18] sm:$0xff]   ;;  %v936_v16 = vld [vmem:[%s1159_s4 + $0x20] sm:$0xff]   ;;  %v937_v17 = vld [vmem:[%s1159_s4 + $0x28] sm:$0xff]  }
  0x15   :  { %834 = vmatpush3.bf16.msra.mxu0 %v921_v1  ;;  %856 = vmatpush3.bf16.msra.mxu1 %v932_v12  ;;  %v938_v18 = vld [vmem:[%s1159_s4 + $0x30] sm:$0xff]   ;;  %v939_v19 = vld [vmem:[%s1159_s4 + $0x38] sm:$0xff]  }
  0x16   :  { %835 = vmatprep.subr.bf16.mxu0 %v922_v2  ;;  %857 = vmatprep.subr.bf16.mxu1 %v933_v13 }
  0x19   :  { %836 = vmatpush3.bf16.msra.mxu0 %v922_v2  ;;  %858 = vmatpush3.bf16.msra.mxu1 %v933_v13 }
  0x1a   :  { %837 = vmatprep.subr.bf16.mxu0 %v923_v3  ;;  %859 = vmatprep.subr.bf16.mxu1 %v934_v14 }
  0x1d   :  { %838 = vmatpush3.bf16.msra.mxu0 %v923_v3  ;;  %860 = vmatpush3.bf16.msra.mxu1 %v934_v14 }
  0x1e   :  { %839 = vmatprep.subr.bf16.mxu0 %v924_v5  ;;  %861 = vmatprep.subr.bf16.mxu1 %v935_v15 }
  0x21   :  { %840 = vmatpush3.bf16.msra.mxu0 %v924_v5  ;;  %862 = vmatpush3.bf16.msra.mxu1 %v935_v15  ;;  %v245_v5 = vshrl.u32 %v244_v4, 7 }
  0x22   :  { %841 = vmatprep.subr.bf16.mxu0 %v925_v6  ;;  %863 = vmatprep.subr.bf16.mxu1 %v936_v16 }
  0x25   :  { %842 = vmatpush3.bf16.msra.mxu0 %v925_v6  ;;  %864 = vmatpush3.bf16.msra.mxu1 %v936_v16  ;;  %v237_v6 = vld [vmem:[%s1156_s1] sm:$0x1] }
  0x26   :  { %843 = vmatprep.subr.bf16.mxu0 %v926_v7  ;;  %865 = vmatprep.subr.bf16.mxu1 %v937_v17 }
  0x29   :  { %844 = vmatpush3.bf16.msra.mxu0 %v926_v7  ;;  %866 = vmatpush3.bf16.msra.mxu1 %v937_v17  ;;  %v1075_v7 = vsub.s32 0, %v245_v5 }
  0x2a   :  { %845 = vmatprep.subr.bf16.mxu0 %v927_v8  ;;  %867 = vmatprep.subr.bf16.mxu1 %v938_v18 }
  0x2d   :  { %846 = vmatpush3.bf16.msra.mxu0 %v927_v8  ;;  %868 = vmatpush3.bf16.msra.mxu1 %v938_v18 }
  0x2e   :  { %869 = vmatprep.subr.bf16.mxu1 %v939_v19 }
  0x30   :  { %848 = vmatmul.mubr.bf16.vlgmr.msra.gmra.mrb[0].mxu0 %v929_v9 }
  0x31   :  { %851 = vmatprep.mubr.bf16.mxu0 %v930_v10  ;;  %870 = vmatpush3.bf16.msra.mxu1 %v939_v19  ;;  %v238_v10 = vld [vmem:[%s1156_s1 + $0x1] sm:$0x1] }
  0x38   :  { %852 = vmatmul.mubr.bf16.gmra.mrb[4].mxu0 %v931_v11 }
 0x103   :  { %v1067_v20 = vpop.f32.mrb[0].mxu0 }
 0x104   :  { %v167_v21 = vpop.f32.mrb[1].mxu0  ;;  %v200_v27 = vmul.f32 %v1067_v20, %v1067_v20 }
 0x105   :  { %v850_v22 = vpop.f32.mrb[2].mxu0  ;;  %v198_v24 = vmul.f32 %v167_v21, %v167_v21 }
 0x106   :  { %v170_v23 = vpop.f32.mrb[3].mxu0  ;;  %v201_v30 = vmul.f32 %v850_v22, %v850_v22 }
 0x107   :  { %v199_v25 = vmul.f32 %v170_v23, %v170_v23  ;;  %v206_v26 = vadd.f32 %v170_v23, %v167_v21 }
 0x109   :  { %v207_v28 = vadd.f32 %v1067_v20, %v206_v26  ;;  %v219_v29 = vadd.f32 %v199_v25, %v198_v24 }
 0x10b   :  { %v220_v31 = vadd.f32 %v219_v29, %v200_v27  ;;  %v853_v32 = vpop.f32.mrb[4].mxu0  ;;  %v208_v33 = vadd.f32 %v850_v22, %v207_v28  ;;  %v277_v27 = vstv %s268_s15 }
 0x10c   :  { %v183_v34 = vpop.f32.mrb[5].mxu0  ;;  %v204_v43 = vmul.f32 %v853_v32, %v853_v32 }
 0x10d   :  { %v202_v35 = vmul.f32 %v183_v34, %v183_v34  ;;  %v209_v36 = vadd.f32 %v208_v33, %v183_v34  ;;  %v221_v37 = vadd.f32 %v220_v31, %v201_v30  ;;  %v854_v38 = vpop.f32.mrb[6].mxu0 }
 0x10e   :  { %v186_v39 = vpop.f32.mrb[7].mxu0  ;;  %v205_v46 = vmul.f32 %v854_v38, %v854_v38 }
 0x10f   :  { %v222_v40 = vadd.f32 %v221_v37, %v202_v35  ;;  %v203_v41 = vmul.f32 %v186_v39, %v186_v39  ;;  %v210_v42 = vadd.f32 %v209_v36, %v186_v39 }
 0x111   :  { %v211_v44 = vadd.f32 %v853_v32, %v210_v42  ;;  %v223_v45 = vadd.f32 %v222_v40, %v203_v41 }
 0x113   :  { %v212_v47 = vadd.f32 %v854_v38, %v211_v44  ;;  %v224_v48 = vadd.f32 %v223_v45, %v204_v43 }
 0x115   :  { %v213_v49 = vrot.slane %v212_v47, 4  ;;  %v225_v50 = vadd.f32 %v224_v48, %v205_v46 }
 0x117   :  { %v214_v51 = vadd.f32 %v213_v49, %v212_v47  ;;  %v226_v52 = vrot.slane %v225_v50, 4 }
 0x119   :  { %v215_v53 = vrot.slane %v214_v51, 2  ;;  %v227_v54 = vadd.f32 %v226_v52, %v225_v50  ;;  %v940_v52 = vld [vmem:[%s1160_s5] sm:$0xff]  }
 0x11a   :  { %879 = vmatprep.subr.bf16.mxu0 %v940_v52  ;;  %903 = vmatprep.subr.bf16.mxu1 %v940_v52 }
 0x11b   :  { %v216_v55 = vadd.f32 %v215_v53, %v214_v51  ;;  %v228_v56 = vrot.slane %v227_v54, 2  ;;  %880 = vmatpush3.bf16.msra.mxu0 %v940_v52  ;;  %v941_v53 = vld [vmem:[%s1160_s5 + $0x8] sm:$0xff]  }
 0x11c   :  { %881 = vmatprep.subr.bf16.mxu0 %v941_v53 }
 0x11d   :  { %v217_v57 = vrot.slane %v216_v55, 1  ;;  %v229_v58 = vadd.f32 %v228_v56, %v227_v54  ;;  %v942_v54 = vld [vmem:[%s1160_s5 + $0x10] sm:$0xff]   ;;  %v944_v56 = vld [vmem:[%s1160_s5 + $0x20] sm:$0xff]  }
 0x11f   :  { %v218_v59 = vadd.f32 %v217_v57, %v216_v55  ;;  %v230_v60 = vrot.slane %v229_v58, 1  ;;  %882 = vmatpush3.bf16.msra.mxu0 %v941_v53  ;;  %v943_v55 = vld [vmem:[%s1160_s5 + $0x18] sm:$0xff]   ;;  %v945_v57 = vld [vmem:[%s1160_s5 + $0x28] sm:$0xff]  }
 0x120   :  { %883 = vmatprep.subr.bf16.mxu0 %v942_v54 }
 0x121   :  { %v231_v61 = vadd.f32 %v230_v60, %v229_v58  ;;  %v232_v62 = vmul.f32 0.015625, %v218_v59  ;;  %v946_v58 = vld [vmem:[%s1160_s5 + $0x30] sm:$0xff]   ;;  %v947_v59 = vld [vmem:[%s1160_s5 + $0x38] sm:$0xff]  }
 0x123   :  { %v233_v63 = vmul.f32 0.015625, %v231_v61  ;;  %v234_v0 = vmul.f32 %v232_v62, %v232_v62  ;;  %884 = vmatpush3.bf16.msra.mxu0 %v942_v54 }
 0x124   :  { %885 = vmatprep.subr.bf16.mxu0 %v943_v55 }
 0x125   :  { %v235_v1 = vsub.f32 %v233_v63, %v234_v0 }
 0x127   :  { %v236_v2 = vmax.f32 %v235_v1, 0.0  ;;  %886 = vmatpush3.bf16.msra.mxu0 %v943_v55 }
 0x128   :  { %887 = vmatprep.subr.bf16.mxu0 %v944_v56 }
 0x129   :  { %v239_v3 = vadd.f32 1e-05, %v236_v2 }
 0x12b   :  { %948 = vrsqrt.f32 %v239_v3  ;;  %888 = vmatpush3.bf16.msra.mxu0 %v944_v56 }
 0x12c   :  { %889 = vmatprep.subr.bf16.mxu0 %v945_v57 }
 0x12f   :  { %890 = vmatpush3.bf16.msra.mxu0 %v945_v57 }
 0x130   :  { %891 = vmatprep.subr.bf16.mxu0 %v946_v58 }
 0x133   :  { %892 = vmatpush3.bf16.msra.mxu0 %v946_v58 }
 0x134   :  { %893 = vmatprep.subr.bf16.mxu0 %v947_v59 }
 0x135   :  { %v949_v8 = vpop.eup %948 }
 0x136   :  { %v241_v9 = vmul.f32 %v949_v8, %v237_v6 }
 0x137   :  { %894 = vmatpush3.bf16.msra.mxu0 %v947_v59 }
 0x138   :  { %v242_v11 = vmul.f32 %v241_v9, %v232_v62  ;;  %v247_v12 = vrot.slane %v241_v9, %v1075_v7 }
 0x13a   :  { %v243_v13 = vsub.f32 %v238_v10, %v242_v11  ;;  %v253_v14 = vmul.f32 %v247_v12, %v186_v39  ;;  %v248_v15 = vmul.f32 %v247_v12, %v167_v21  ;;  %v249_v16 = vmul.f32 %v247_v12, %v170_v23 }
 0x13b   :  { %v250_v17 = vmul.f32 %v1067_v20, %v247_v12  ;;  %v251_v18 = vmul.f32 %v850_v22, %v247_v12  ;;  %v252_v19 = vmul.f32 %v247_v12, %v183_v34  ;;  %v254_v24 = vmul.f32 %v853_v32, %v247_v12 }
 0x13c   :  { %v259_v25 = vrot.slane %v243_v13, %v1075_v7  ;;  %v255_v26 = vmul.f32 %v854_v38, %v247_v12 }
 0x13e   :  { %v265_v28 = vadd.f32 %v259_v25, %v253_v14  ;;  %v260_v29 = vadd.f32 %v259_v25, %v248_v15  ;;  %v261_v30 = vadd.f32 %v259_v25, %v249_v16  ;;  %v262_v31 = vadd.f32 %v259_v25, %v250_v17 }
 0x13f   :  { %v263_v33 = vadd.f32 %v259_v25, %v251_v18  ;;  %v264_v35 = vadd.f32 %v259_v25, %v252_v19  ;;  %v266_v36 = vadd.f32 %v259_v25, %v254_v24  ;;  %v267_v37 = vadd.f32 %v259_v25, %v255_v26 }
 0x140   :  { %vm269_vm0 = vcmp.gt.f32.partialorder %v260_v29, 0.0  ;;  %vm270_vm1 = vcmp.gt.f32.partialorder %v261_v30, 0.0  ;;  %v278_v21 = vmul.f32 %v277_v27, %v260_v29  ;;  %v279_v23 = vmul.f32 %v277_v27, %v261_v30 }
 0x141   :  { %vm271_vm2 = vcmp.gt.f32.partialorder %v262_v31, 0.0  ;;  %vm272_vm3 = vcmp.gt.f32.partialorder %v263_v33, 0.0  ;;  %v280_v20 = vmul.f32 %v277_v27, %v262_v31  ;;  %v281_v22 = vmul.f32 %v277_v27, %v263_v33 }
 0x142   :  { %v286_v32 = vsel %vm269_vm0, %v260_v29, %v278_v21  ;;  %v287_v34 = vsel %vm270_vm1, %v261_v30, %v279_v23  ;;  %vm273_vm4 = vcmp.gt.f32.partialorder %v264_v35, 0.0  ;;  %vm274_vm5 = vcmp.gt.f32.partialorder %v265_v28, 0.0 }
 0x143   :  { %v294_v38 = vpack.c.bf16 %v287_v34, %v286_v32  ;;  %v288_v39 = vsel %vm271_vm2, %v262_v31, %v280_v20  ;;  %v289_v40 = vsel %vm272_vm3, %v263_v33, %v281_v22  ;;  %v282_v41 = vmul.f32 %v277_v27, %v264_v35 }
 0x144   :  { %v295_v42 = vpack.c.bf16 %v289_v40, %v288_v39  ;;  %v283_v43 = vmul.f32 %v277_v27, %v265_v28  ;;  %vm275_vm6 = vcmp.gt.f32.partialorder %v266_v36, 0.0  ;;  %vm276_vm7 = vcmp.gt.f32.partialorder %v267_v37, 0.0 }
 0x145   :  { %871 = vmatprep.mubr.bf16.mxu1 %v294_v38  ;;  %v290_v44 = vsel %vm273_vm4, %v264_v35, %v282_v41  ;;  %v284_v45 = vmul.f32 %v277_v27, %v266_v36  ;;  %v285_v46 = vmul.f32 %v277_v27, %v267_v37 }
 0x146   :  { %872 = vmatmul.mubr.bf16.vlgmr.msra.gmra.mrb[0].mxu1 %v295_v42  ;;  %v291_v47 = vsel %vm274_vm5, %v265_v28, %v283_v43 }
 0x147   :  { %v296_v48 = vpack.c.bf16 %v291_v47, %v290_v44  ;;  %v292_v49 = vsel %vm275_vm6, %v266_v36, %v284_v45  ;;  %v293_v50 = vsel %vm276_vm7, %v267_v37, %v285_v46  ;;  %911 = vmatpush3.bf16.msra.mxu1 %v940_v52  ;;  %v466_v45 = vld [vmem:[%s1156_s1 + $0x2] sm:$0x1] }
 0x148   :  { %v297_v51 = vpack.c.bf16 %v293_v50, %v292_v49  ;;  %904 = vmatprep.subr.bf16.mxu1 %v941_v53 }
 0x149   :  { %875 = vmatprep.mubr.bf16.mxu1 %v296_v48  ;;  %v467_v48 = vld [vmem:[%s1156_s1 + $0x3] sm:$0x1] }
 0x14b   :  { %912 = vmatpush3.bf16.msra.mxu1 %v941_v53 }
 0x14c   :  { %905 = vmatprep.subr.bf16.mxu1 %v942_v54 }
 0x14e   :  { %876 = vmatmul.mubr.bf16.gmra.mrb[4].mxu1 %v297_v51 }
 0x14f   :  { %913 = vmatpush3.bf16.msra.mxu1 %v942_v54 }
 0x150   :  { %906 = vmatprep.subr.bf16.mxu1 %v943_v55 }
 0x153   :  { %914 = vmatpush3.bf16.msra.mxu1 %v943_v55 }
 0x154   :  { %907 = vmatprep.subr.bf16.mxu1 %v944_v56 }
 0x157   :  { %915 = vmatpush3.bf16.msra.mxu1 %v944_v56 }
 0x158   :  { %908 = vmatprep.subr.bf16.mxu1 %v945_v57 }
 0x15b   :  { %916 = vmatpush3.bf16.msra.mxu1 %v945_v57 }
 0x15c   :  { %909 = vmatprep.subr.bf16.mxu1 %v946_v58 }
 0x15f   :  { %917 = vmatpush3.bf16.msra.mxu1 %v946_v58 }
 0x160   :  { %910 = vmatprep.subr.bf16.mxu1 %v947_v59 }
 0x163   :  { %918 = vmatpush3.bf16.msra.mxu1 %v947_v59 }
 0x219   :  { %v873_v60 = vpop.f32.mrb[0].mxu1 }
 0x21a   :  { %v396_v61 = vpop.f32.mrb[1].mxu1  ;;  %v429_v3 = vmul.f32 %v873_v60, %v873_v60 }
 0x21b   :  { %v874_v62 = vpop.f32.mrb[2].mxu1  ;;  %v427_v0 = vmul.f32 %v396_v61, %v396_v61 }
 0x21c   :  { %v399_v63 = vpop.f32.mrb[3].mxu1  ;;  %v430_v6 = vmul.f32 %v874_v62, %v874_v62 }
 0x21d   :  { %v428_v1 = vmul.f32 %v399_v63, %v399_v63  ;;  %v435_v2 = vadd.f32 %v399_v63, %v396_v61 }
 0x21f   :  { %v436_v4 = vadd.f32 %v873_v60, %v435_v2  ;;  %v448_v5 = vadd.f32 %v428_v1, %v427_v0  ;;  %v506_v1 = vstv %s785_s8 }
 0x221   :  { %v449_v8 = vadd.f32 %v448_v5, %v429_v3  ;;  %v877_v9 = vpop.f32.mrb[4].mxu1  ;;  %v437_v10 = vadd.f32 %v874_v62, %v436_v4 }
 0x222   :  { %v412_v11 = vpop.f32.mrb[5].mxu1  ;;  %v433_v24 = vmul.f32 %v877_v9, %v877_v9 }
 0x223   :  { %v431_v12 = vmul.f32 %v412_v11, %v412_v11  ;;  %v438_v13 = vadd.f32 %v437_v10, %v412_v11  ;;  %v450_v14 = vadd.f32 %v449_v8, %v430_v6  ;;  %v878_v15 = vpop.f32.mrb[6].mxu1 }
 0x224   :  { %v415_v16 = vpop.f32.mrb[7].mxu1  ;;  %v434_v27 = vmul.f32 %v878_v15, %v878_v15 }
 0x225   :  { %v451_v17 = vadd.f32 %v450_v14, %v431_v12  ;;  %v432_v18 = vmul.f32 %v415_v16, %v415_v16  ;;  %v439_v19 = vadd.f32 %v438_v13, %v415_v16 }
 0x227   :  { %v440_v25 = vadd.f32 %v877_v9, %v439_v19  ;;  %v452_v26 = vadd.f32 %v451_v17, %v432_v18 }
 0x229   :  { %v441_v28 = vadd.f32 %v878_v15, %v440_v25  ;;  %v453_v29 = vadd.f32 %v452_v26, %v433_v24 }
 0x22b   :  { %v442_v30 = vrot.slane %v441_v28, 4  ;;  %v454_v31 = vadd.f32 %v453_v29, %v434_v27 }
 0x22d   :  { %v443_v33 = vadd.f32 %v442_v30, %v441_v28  ;;  %v455_v35 = vrot.slane %v454_v31, 4 }
 0x22f   :  { %v444_v36 = vrot.slane %v443_v33, 2  ;;  %v456_v37 = vadd.f32 %v455_v35, %v454_v31 }
 0x231   :  { %v445_v21 = vadd.f32 %v444_v36, %v443_v33  ;;  %v457_v23 = vrot.slane %v456_v37, 2 }
 0x233   :  { %v446_v20 = vrot.slane %v445_v21, 1  ;;  %v458_v22 = vadd.f32 %v457_v23, %v456_v37 }
 0x235   :  { %v447_v32 = vadd.f32 %v446_v20, %v445_v21  ;;  %v459_v34 = vrot.slane %v458_v22, 1 }
 0x237   :  { %v460_v38 = vadd.f32 %v459_v34, %v458_v22  ;;  %v461_v39 = vmul.f32 0.015625, %v447_v32 }
 0x239   :  { %v462_v40 = vmul.f32 0.015625, %v460_v38  ;;  %v463_v41 = vmul.f32 %v461_v39, %v461_v39 }
 0x23b   :  { %v464_v42 = vsub.f32 %v462_v40, %v463_v41 }
 0x23d   :  { %v465_v43 = vmax.f32 %v464_v42, 0.0 }
 0x23f   :  { %v468_v44 = vadd.f32 1e-05, %v465_v43 }
 0x241   :  { %950 = vrsqrt.f32 %v468_v44 }
 0x24b   :  { %v951_v46 = vpop.eup %950 }
 0x24c   :  { %v470_v47 = vmul.f32 %v951_v46, %v466_v45 }
 0x24e   :  { %v471_v49 = vmul.f32 %v470_v47, %v461_v39  ;;  %v476_v50 = vrot.slane %v470_v47, %v1075_v7 }
 0x250   :  { %v472_v51 = vsub.f32 %v467_v48, %v471_v49  ;;  %v482_v52 = vmul.f32 %v476_v50, %v415_v16  ;;  %v477_v53 = vmul.f32 %v476_v50, %v396_v61  ;;  %v478_v54 = vmul.f32 %v476_v50, %v399_v63 }
 0x251   :  { %v481_v55 = vmul.f32 %v476_v50, %v412_v11  ;;  %v479_v56 = vmul.f32 %v873_v60, %v476_v50  ;;  %v480_v57 = vmul.f32 %v874_v62, %v476_v50  ;;  %v483_v58 = vmul.f32 %v877_v9, %v476_v50 }
 0x252   :  { %v488_v59 = vrot.slane %v472_v51, %v1075_v7  ;;  %v484_v0 = vmul.f32 %v878_v15, %v476_v50 }
 0x254   :  { %v494_v2 = vadd.f32 %v488_v59, %v482_v52  ;;  %v489_v3 = vadd.f32 %v488_v59, %v477_v53  ;;  %v490_v4 = vadd.f32 %v488_v59, %v478_v54  ;;  %v493_v5 = vadd.f32 %v488_v59, %v481_v55 }
 0x255   :  { %v491_v6 = vadd.f32 %v488_v59, %v479_v56  ;;  %v492_v8 = vadd.f32 %v488_v59, %v480_v57  ;;  %v495_v10 = vadd.f32 %v488_v59, %v483_v58  ;;  %v496_v12 = vadd.f32 %v488_v59, %v484_v0 }
 0x256   :  { %vm498_vm8 = vcmp.gt.f32.partialorder %v489_v3, 0.0  ;;  %vm499_vm9 = vcmp.gt.f32.partialorder %v490_v4, 0.0  ;;  %v507_v61 = vmul.f32 %v506_v1, %v489_v3  ;;  %v508_v63 = vmul.f32 %v506_v1, %v490_v4 }
 0x257   :  { %vm502_vm10 = vcmp.gt.f32.partialorder %v493_v5, 0.0  ;;  %vm503_vm11 = vcmp.gt.f32.partialorder %v494_v2, 0.0  ;;  %v511_v60 = vmul.f32 %v506_v1, %v493_v5  ;;  %v512_v62 = vmul.f32 %v506_v1, %v494_v2 }
 0x258   :  { %v515_v9 = vsel %vm498_vm8, %v489_v3, %v507_v61  ;;  %v516_v11 = vsel %vm499_vm9, %v490_v4, %v508_v63  ;;  %vm500_vm12 = vcmp.gt.f32.partialorder %v491_v6, 0.0  ;;  %vm501_vm13 = vcmp.gt.f32.partialorder %v492_v8, 0.0 }
 0x259   :  { %v523_v13 = vpack.c.bf16 %v516_v11, %v515_v9  ;;  %v519_v14 = vsel %vm502_vm10, %v493_v5, %v511_v60  ;;  %v520_v15 = vsel %vm503_vm11, %v494_v2, %v512_v62  ;;  %v509_v16 = vmul.f32 %v506_v1, %v491_v6  ;;  %v695_v11 = vld [vmem:[%s1156_s1 + $0x4] sm:$0x1] }
 0x25a   :  { %v525_v17 = vpack.c.bf16 %v520_v15, %v519_v14  ;;  %v510_v18 = vmul.f32 %v506_v1, %v492_v8  ;;  %vm504_vm14 = vcmp.gt.f32.partialorder %v495_v10, 0.0  ;;  %vm505_vm15 = vcmp.gt.f32.partialorder %v496_v12, 0.0  ;;  %v696_v15 = vld [vmem:[%s1156_s1 + $0x5] sm:$0x1] }
 0x25b   :  { %895 = vmatprep.mubr.bf16.mxu0 %v523_v13  ;;  %v517_v19 = vsel %vm500_vm12, %v491_v6, %v509_v16  ;;  %v513_v24 = vmul.f32 %v506_v1, %v495_v10  ;;  %v514_v25 = vmul.f32 %v506_v1, %v496_v12 }
 0x25c   :  { %899 = vmatprep.mubr.bf16.mxu1 %v525_v17  ;;  %v518_v26 = vsel %vm501_vm13, %v492_v8, %v510_v18 }
 0x25d   :  { %v524_v27 = vpack.c.bf16 %v518_v26, %v517_v19  ;;  %v521_v28 = vsel %vm504_vm14, %v495_v10, %v513_v24  ;;  %v522_v29 = vsel %vm505_vm15, %v496_v12, %v514_v25 }
 0x25e   :  { %v526_v30 = vpack.c.bf16 %v522_v29, %v521_v28 }
 0x25f   :  { %896 = vmatmul.mubr.bf16.vlgmr.msra.gmra.mrb[8].mxu0 %v524_v27 }
 0x260   :  { %900 = vmatmul.mubr.bf16.vlgmr.msra.gmra.mrb[8].mxu1 %v526_v30 }
 0x332   :  { %v897_v31 = vpop.f32.mrb[8].mxu0 }
 0x333   :  { %v901_v33 = vpop.f32.mrb[8].mxu1  ;;  %v625_v35 = vpop.f32.mrb[9].mxu0  ;;  %v658_v38 = vmul.f32 %v897_v31, %v897_v31 }
 0x334   :  { %v641_v36 = vpop.f32.mrb[9].mxu1  ;;  %v898_v37 = vpop.f32.mrb[10].mxu0  ;;  %v656_v20 = vmul.f32 %v625_v35, %v625_v35  ;;  %v662_v50 = vmul.f32 %v901_v33, %v901_v33 }
 0x335   :  { %v902_v21 = vpop.f32.mrb[10].mxu1  ;;  %v628_v23 = vpop.f32.mrb[11].mxu0  ;;  %v659_v41 = vmul.f32 %v898_v37, %v898_v37  ;;  %v660_v44 = vmul.f32 %v641_v36, %v641_v36 }
 0x336   :  { %v657_v22 = vmul.f32 %v628_v23, %v628_v23  ;;  %v664_v32 = vadd.f32 %v628_v23, %v625_v35  ;;  %v644_v34 = vpop.f32.mrb[11].mxu1  ;;  %v663_v53 = vmul.f32 %v902_v21, %v902_v21 }
 0x337   :  { %v661_v47 = vmul.f32 %v644_v34, %v644_v34 }
 0x338   :  { %v665_v39 = vadd.f32 %v897_v31, %v664_v32  ;;  %v677_v40 = vadd.f32 %v657_v22, %v656_v20  ;;  %v735_v22 = vstv %s794_s13 }
 0x33a   :  { %v678_v42 = vadd.f32 %v677_v40, %v658_v38  ;;  %v666_v43 = vadd.f32 %v898_v37, %v665_v39 }
 0x33c   :  { %v667_v45 = vadd.f32 %v666_v43, %v641_v36  ;;  %v679_v46 = vadd.f32 %v678_v42, %v659_v41 }
 0x33e   :  { %v668_v48 = vadd.f32 %v667_v45, %v644_v34  ;;  %v680_v49 = vadd.f32 %v679_v46, %v660_v44 }
 0x340   :  { %v669_v51 = vadd.f32 %v901_v33, %v668_v48  ;;  %v681_v52 = vadd.f32 %v680_v49, %v661_v47 }
 0x342   :  { %v670_v54 = vadd.f32 %v902_v21, %v669_v51  ;;  %v682_v55 = vadd.f32 %v681_v52, %v662_v50 }
 0x344   :  { %v671_v56 = vrot.slane %v670_v54, 4  ;;  %v683_v57 = vadd.f32 %v682_v55, %v663_v53 }
 0x346   :  { %v672_v58 = vadd.f32 %v671_v56, %v670_v54  ;;  %v684_v59 = vrot.slane %v683_v57, 4 }
 0x348   :  { %v673_v0 = vrot.slane %v672_v58, 2  ;;  %v685_v1 = vadd.f32 %v684_v59, %v683_v57 }
 0x34a   :  { %v674_v2 = vadd.f32 %v673_v0, %v672_v58  ;;  %v686_v3 = vrot.slane %v685_v1, 2 }
 0x34c   :  { %v675_v4 = vrot.slane %v674_v2, 1  ;;  %v687_v5 = vadd.f32 %v686_v3, %v685_v1 }
 0x34e   :  { %v676_v6 = vadd.f32 %v675_v4, %v674_v2  ;;  %v688_v8 = vrot.slane %v687_v5, 1 }
 0x350   :  { %v689_v10 = vadd.f32 %v688_v8, %v687_v5  ;;  %v690_v12 = vmul.f32 0.015625, %v676_v6 }
 0x352   :  { %v691_v61 = vmul.f32 0.015625, %v689_v10  ;;  %v692_v63 = vmul.f32 %v690_v12, %v690_v12 }
 0x354   :  { %v693_v60 = vsub.f32 %v691_v61, %v692_v63 }
 0x356   :  { %v694_v62 = vmax.f32 %v693_v60, 0.0 }
 0x358   :  { %v697_v9 = vadd.f32 1e-05, %v694_v62 }
 0x35a   :  { %952 = vrsqrt.f32 %v697_v9 }
 0x364   :  { %v953_v13 = vpop.eup %952 }
 0x365   :  { %v699_v14 = vmul.f32 %v953_v13, %v695_v11 }
 0x367   :  { %v700_v16 = vmul.f32 %v699_v14, %v690_v12  ;;  %v705_v17 = vrot.slane %v699_v14, %v1075_v7 }
 0x369   :  { %v701_v18 = vsub.f32 %v696_v15, %v700_v16  ;;  %v706_v19 = vmul.f32 %v705_v17, %v625_v35  ;;  %v707_v24 = vmul.f32 %v705_v17, %v628_v23  ;;  %v708_v25 = vmul.f32 %v897_v31, %v705_v17 }
 0x36a   :  { %v709_v26 = vmul.f32 %v898_v37, %v705_v17  ;;  %v710_v27 = vmul.f32 %v705_v17, %v641_v36  ;;  %v711_v28 = vmul.f32 %v705_v17, %v644_v34  ;;  %v712_v29 = vmul.f32 %v901_v33, %v705_v17 }
 0x36b   :  { %v713_v30 = vmul.f32 %v902_v21, %v705_v17  ;;  %v717_v20 = vrot.slane %v701_v18, %v1075_v7 }
 0x36d   :  { %v718_v32 = vadd.f32 %v717_v20, %v706_v19  ;;  %v719_v38 = vadd.f32 %v717_v20, %v707_v24  ;;  %v720_v39 = vadd.f32 %v717_v20, %v708_v25  ;;  %v721_v40 = vadd.f32 %v717_v20, %v709_v26 }
 0x36e   :  { %v722_v41 = vadd.f32 %v717_v20, %v710_v27  ;;  %v723_v42 = vadd.f32 %v717_v20, %v711_v28  ;;  %v724_v43 = vadd.f32 %v717_v20, %v712_v29  ;;  %v725_v44 = vadd.f32 %v717_v20, %v713_v30 }
 0x36f   :  { %vm727_vm0 = vcmp.gt.f32.partialorder %v718_v32, 0.0  ;;  %vm728_vm1 = vcmp.gt.f32.partialorder %v719_v38, 0.0  ;;  %vm729_vm2 = vcmp.gt.f32.partialorder %v720_v39, 0.0  ;;  %vm730_vm3 = vcmp.gt.f32.partialorder %v721_v40, 0.0 }
 0x370   :  { %vm731_vm4 = vcmp.gt.f32.partialorder %v722_v41, 0.0  ;;  %vm732_vm5 = vcmp.gt.f32.partialorder %v723_v42, 0.0  ;;  %vm733_vm6 = vcmp.gt.f32.partialorder %v724_v43, 0.0  ;;  %vm734_vm7 = vcmp.gt.f32.partialorder %v725_v44, 0.0 }
 0x371   :  { %v736_v31 = vmul.f32 %v735_v22, %v718_v32  ;;  %v737_v33 = vmul.f32 %v735_v22, %v719_v38  ;;  %v738_v7 = vmul.f32 %v735_v22, %v720_v39  ;;  %v739_v35 = vmul.f32 %v735_v22, %v721_v40 }
 0x372   :  { %v740_v36 = vmul.f32 %v735_v22, %v722_v41  ;;  %v741_v37 = vmul.f32 %v735_v22, %v723_v42  ;;  %v742_v21 = vmul.f32 %v735_v22, %v724_v43  ;;  %v743_v23 = vmul.f32 %v735_v22, %v725_v44 }
 0x373   :  { %v744_v34 = vsel %vm727_vm0, %v718_v32, %v736_v31  ;;  %v745_v45 = vsel %vm728_vm1, %v719_v38, %v737_v33  ;;  %v746_v46 = vsel %vm729_vm2, %v720_v39, %v738_v7  ;;  %v747_v47 = vsel %vm730_vm3, %v721_v40, %v739_v35 }
 0x374   :  { %v748_v48 = vsel %vm731_vm4, %v722_v41, %v740_v36  ;;  %v749_v49 = vsel %vm732_vm5, %v723_v42, %v741_v37  ;;  %v750_v50 = vsel %vm733_vm6, %v724_v43, %v742_v21  ;;  %v751_v51 = vsel %vm734_vm7, %v725_v44, %v743_v23  ;;  %752 = vst [vmem:[%s1161_s6] sm:$0xff] %v744_v34 }
 0x375   :  { %753 = vst [vmem:[%s1161_s6 + $0x8] sm:$0xff] %v745_v45  ;;  %754 = vst [vmem:[%s1161_s6 + $0x10] sm:$0xff] %v746_v46 }
 0x376   :  { %755 = vst [vmem:[%s1161_s6 + $0x18] sm:$0xff] %v747_v47  ;;  %756 = vst [vmem:[%s1161_s6 + $0x20] sm:$0xff] %v748_v48 }
 0x377   :  { %757 = vst [vmem:[%s1161_s6 + $0x28] sm:$0xff] %v749_v49  ;;  %758 = vst [vmem:[%s1161_s6 + $0x30] sm:$0xff] %v750_v50 }
 0x378   :  { %759 = vst [vmem:[%s1161_s6 + $0x38] sm:$0xff] %v751_v51 }
 0x379   :  { %764 = vsyncpa [#allocation3], 1 }

</bundles_post_ra>
